<compile_context>
chip_gen: v6e
topology: v6e:2x2x1
jax: 0.10.0
libtpu: 0.0.40
codegen_flags: <defaults>
</compile_context>

<pallas_src>
import numpy as np
import jax
import jax.numpy as jnp
from jax.experimental import pallas as pl
from jax.experimental.pallas import tpu as pltpu


# ----------------------------------------------------------------------------
# Host-side construction of the tiny resize matrices (built once, cast to bf16)
# ----------------------------------------------------------------------------
def _bilinear_down_matrix(out_size: int, in_size: int) -> np.ndarray:
    """Rows blend input pixels exactly like F.interpolate(mode='bilinear',
    align_corners=False, antialias=False) along one axis."""
    w = np.zeros((out_size, in_size), dtype=np.float32)
    scale = in_size / out_size
    for i in range(out_size):
        src = (i + 0.5) * scale - 0.5
        src = max(src, 0.0)                       # PyTorch clamps negatives to 0
        i0 = int(np.floor(src))
        i0 = min(i0, in_size - 1)
        i1 = min(i0 + 1, in_size - 1)
        lam = src - i0
        w[i, i0] += 1.0 - lam
        w[i, i1] += lam
    return w


def _nearest_up_matrix(out_size: int, in_size: int) -> np.ndarray:
    """One-hot rows implementing torchvision NEAREST: src = floor(dst*in/out)."""
    u = np.zeros((out_size, in_size), dtype=np.float32)
    scale = in_size / out_size
    for i in range(out_size):
        src = min(int(np.floor(i * scale)), in_size - 1)
        u[i, src] = 1.0
    return u


def _pixelate_matrix(img_size: int, block_size: int) -> np.ndarray:
    """A = U_nearest_up @ W_bilinear_down, shape (img_size, img_size), f32."""
    p = img_size // block_size
    if p < 1:
        raise ValueError("block_size larger than image size")
    return _nearest_up_matrix(img_size, p) @ _bilinear_down_matrix(p, img_size)


def _pick_nc_tile(nc: int, h: int, w: int,
                  budget_bytes: int = 20 * 1024 * 1024, max_tile: int = 32) -> int:
    # per plane: bf16 input (double buffered) + f32 output (double buffered)
    #            + f32 intermediate scratch
    per_plane = h * w * (2 * 2 + 2 * 4 + 4)
    tile = max(1, min(max_tile, budget_bytes // max(per_plane, 1)))
    return int(min(tile, nc))


# ----------------------------------------------------------------------------
# Pallas kernel: out[n] = A_h @ x[n] @ A_w^T for a batch of NC_TILE planes
# ----------------------------------------------------------------------------
def _pixelate_kernel(x_ref, ah_ref, awt_ref, o_ref, z_ref):
    nc_t, h, w = x_ref.shape

    # (1) W-axis contraction for all planes at once: one big lane-dense matmul
    #     (nc_t*h, w) @ (w, w), bf16 inputs, f32 accumulation.
    x2d = x_ref[...].reshape(nc_t * h, w)
    z = jnp.dot(x2d, awt_ref[...], preferred_element_type=jnp.float32)
    z_ref[...] = z.reshape(nc_t, h, w)          # keep intermediate in f32 VMEM

    # (2) H-axis contraction per plane: A_h @ z[n]  (short unrolled MXU loop,
    #     no in-kernel transpose needed).
    for n in range(nc_t):
        zn = z_ref[n].astype(jnp.bfloat16)
        o_ref[n] = jnp.dot(ah_ref[...], zn,
                           preferred_element_type=jnp.float32).astype(o_ref.dtype)


def pixelate(img: jax.Array, block_size: int, *, nc_tile: int | None = None,
             interpret: bool = False) -> jax.Array:
    """Eval-mode Pixelate(block_size) on an NCHW image batch."""
    n, c, h, w = img.shape
    if h != w:
        raise ValueError("Pixelate expects square images (module uses shape[-1] only).")

    a = _pixelate_matrix(h, block_size)                 # (H, H) f32
    a_h = jnp.asarray(a, jnp.bfloat16)                  # resident weight
    a_wt = jnp.asarray(a.T, jnp.bfloat16)               # pre-transposed on host

    nc = n * c
    if nc_tile is None:
        nc_tile = _pick_nc_tile(nc, h, w)
    nc_pad = ((nc + nc_tile - 1) // nc_tile) * nc_tile

    x = img.reshape(nc, h, w).astype(jnp.bfloat16)      # halve HBM bytes moved
    if nc_pad != nc:
        x = jnp.pad(x, ((0, nc_pad - nc), (0, 0), (0, 0)))

    out = pl.pallas_call(
        _pixelate_kernel,
        out_shape=jax.ShapeDtypeStruct((nc_pad, h, w), img.dtype),
        grid_spec=pltpu.PrefetchScalarGridSpec(
            num_scalar_prefetch=0,
            grid=(nc_pad // nc_tile,),
            in_specs=[
                pl.BlockSpec((nc_tile, h, w), lambda i: (i, 0, 0)),
                pl.BlockSpec((h, h), lambda i: (0, 0)),   # A_h   resident in VMEM
                pl.BlockSpec((w, w), lambda i: (0, 0)),   # A_w^T resident in VMEM
            ],
            out_specs=pl.BlockSpec((nc_tile, h, w), lambda i: (i, 0, 0)),
            scratch_shapes=[pltpu.VMEM((nc_tile, h, w), jnp.float32)],
        ),
        compiler_params=pltpu.CompilerParams(
            dimension_semantics=("parallel",),            # shards over v7x's 2 TCs
            vmem_limit_bytes=32 * 1024 * 1024,
        ),
        interpret=interpret,
    )(x, a_h, a_wt)

    return out[:nc].reshape(n, c, h, w)


# ----------------------------------------------------------------------------
# Minimal Obfuscator front-end (pixelate branch only, eval mode)
# ----------------------------------------------------------------------------
class Pixelate:
    def __init__(self, block_size_avg: int):
        if not isinstance(block_size_avg, int):
            raise ValueError("block_size_avg must be int")
        self.block_size_avg = block_size_avg
        self.training = False  # eval mode: deterministic block_size_avg

    def __call__(self, img, *_):
        return pixelate(img, self.block_size_avg)


class Obfuscator:
    def __init__(self, options: str):
        self.name, *obf_params = options.split("_")
        self.fullname = options
        self.training = False
        if self.name == "pixelate":
            (block_size_avg,) = obf_params
            self.func = Pixelate(int(block_size_avg))
        else:
            raise NotImplementedError(
                f"Obfuscator branch '{self.name}' is not implemented in Pallas.")

    def __call__(self, x, target=None):
        self.func.training = self.training
        return self.func(x, target)


# ----------------------------------------------------------------------------
# Demo / self-check
# ----------------------------------------------------------------------------
if __name__ == "__main__":
    key = jax.random.PRNGKey(0)
    N, C, H = 2, 3, 16
    block_size_avg = 4
    x = jax.random.normal(key, (N, C, H, H), dtype=jnp.float32)

    obf = Obfuscator(f"pixelate_{block_size_avg}")
    y = jax.block_until_ready(obf(x))
    assert y.shape == x.shape and y.dtype == x.dtype

    # bf16-consistent pure-numpy reference: out[n,c] = A @ x[n,c] @ A^T
    a = _pixelate_matrix(H, block_size_avg)
    a_b = np.asarray(jnp.asarray(a, jnp.bfloat16), dtype=np.float32)
    x_b = np.asarray(x.astype(jnp.bfloat16), dtype=np.float32)
    ref = np.einsum("ik,nckl,jl->ncij", a_b, x_b, a_b)
    np.testing.assert_allclose(np.asarray(y, np.float32), ref, atol=5e-2, rtol=0)

    print("KERNEL_OK")
</pallas_src>

<mosaic_0001>
module attributes {stable_mosaic.version = 11 : i64} {
  func.func @_pixelate_kernel(%arg0: i32, %arg1: memref<6x16x16xbf16, #tpu.memory_space<vmem>>, %arg2: memref<16x16xbf16, #tpu.memory_space<vmem>>, %arg3: memref<16x16xbf16, #tpu.memory_space<vmem>>, %arg4: memref<6x16x16xf32, #tpu.memory_space<vmem>>, %arg5: memref<6x16x16xf32, #tpu.memory_space<vmem>>) attributes {dimension_semantics = [#tpu.dimension_semantics<parallel>], iteration_bounds = array<i64: 1>, scalar_prefetch = 0 : i64, scratch_operands = 1 : i64, tpu.core_type = #tpu.core_type<tc>, window_params = [{transform_indices = @transform_0, window_bounds = array<i64: 6, 16, 16>}, {pipeline_mode = #tpu.pipeline_mode<synchronous>, transform_indices = @transform_1, window_bounds = array<i64: 16, 16>}, {pipeline_mode = #tpu.pipeline_mode<synchronous>, transform_indices = @transform_2, window_bounds = array<i64: 16, 16>}, {transform_indices = @transform_3, window_bounds = array<i64: 6, 16, 16>}]} {
    %c0 = arith.constant 0 : index
    %c0_0 = arith.constant 0 : index
    %c0_1 = arith.constant 0 : index
    %0 = vector.load %arg1[%c0, %c0_0, %c0_1] : memref<6x16x16xbf16, #tpu.memory_space<vmem>>, vector<6x16x16xbf16>
    %1 = vector.shape_cast %0 : vector<6x16x16xbf16> to vector<96x16xbf16>
    %c0_2 = arith.constant 0 : index
    %c0_3 = arith.constant 0 : index
    %2 = vector.load %arg3[%c0_2, %c0_3] : memref<16x16xbf16, #tpu.memory_space<vmem>>, vector<16x16xbf16>
    %cst = arith.constant dense<0.000000e+00> : vector<96x16xf32>
    %3 = tpu.matmul %1, %2, %cst {dimension_numbers = #tpu.dot_dimension_numbers<[1], [0], [0], [1], [0, 0, 1, 1], [], []>} : vector<96x16xbf16>, vector<16x16xbf16>, vector<96x16xf32> -> vector<96x16xf32>
    %4 = vector.shape_cast %3 : vector<96x16xf32> to vector<6x16x16xf32>
    %c0_4 = arith.constant 0 : index
    %c0_5 = arith.constant 0 : index
    %c0_6 = arith.constant 0 : index
    %5 = vector.load %arg5[%c0_4, %c0_5, %c0_6] : memref<6x16x16xf32, #tpu.memory_space<vmem>>, vector<6x16x16xf32>
    tpu.vector_store %arg5[%c0_4, %c0_5, %c0_6], %4 {strides = array<i32>} : memref<6x16x16xf32, #tpu.memory_space<vmem>>, vector<6x16x16xf32>,
    %c0_7 = arith.constant 0 : index
    %c0_8 = arith.constant 0 : index
    %c0_9 = arith.constant 0 : index
    %6 = vector.load %arg5[%c0_7, %c0_8, %c0_9] : memref<6x16x16xf32, #tpu.memory_space<vmem>>, vector<1x16x16xf32>
    %7 = vector.shape_cast %6 : vector<1x16x16xf32> to vector<16x16xf32>
    %8 = arith.truncf %7 : vector<16x16xf32> to vector<16x16xbf16>
    %c0_10 = arith.constant 0 : index
    %c0_11 = arith.constant 0 : index
    %9 = vector.load %arg2[%c0_10, %c0_11] : memref<16x16xbf16, #tpu.memory_space<vmem>>, vector<16x16xbf16>
    %cst_12 = arith.constant dense<0.000000e+00> : vector<16x16xf32>
    %10 = tpu.matmul %9, %8, %cst_12 {dimension_numbers = #tpu.dot_dimension_numbers<[1], [0], [0], [1], [0, 0, 1, 1], [], []>} : vector<16x16xbf16>, vector<16x16xbf16>, vector<16x16xf32> -> vector<16x16xf32>
    %c0_13 = arith.constant 0 : index
    %c0_14 = arith.constant 0 : index
    %c0_15 = arith.constant 0 : index
    %11 = vector.load %arg4[%c0_13, %c0_14, %c0_15] : memref<6x16x16xf32, #tpu.memory_space<vmem>>, vector<1x16x16xf32>
    %12 = vector.shape_cast %11 : vector<1x16x16xf32> to vector<16x16xf32>
    %13 = vector.shape_cast %10 : vector<16x16xf32> to vector<1x16x16xf32>
    tpu.vector_store %arg4[%c0_13, %c0_14, %c0_15], %13 {strides = array<i32>} : memref<6x16x16xf32, #tpu.memory_space<vmem>>, vector<1x16x16xf32>,
    %c1 = arith.constant 1 : index
    %c0_16 = arith.constant 0 : index
    %c0_17 = arith.constant 0 : index
    %14 = vector.load %arg5[%c1, %c0_16, %c0_17] : memref<6x16x16xf32, #tpu.memory_space<vmem>>, vector<1x16x16xf32>
    %15 = vector.shape_cast %14 : vector<1x16x16xf32> to vector<16x16xf32>
    %16 = arith.truncf %15 : vector<16x16xf32> to vector<16x16xbf16>
    %c0_18 = arith.constant 0 : index
    %c0_19 = arith.constant 0 : index
    %17 = vector.load %arg2[%c0_18, %c0_19] : memref<16x16xbf16, #tpu.memory_space<vmem>>, vector<16x16xbf16>
    %cst_20 = arith.constant dense<0.000000e+00> : vector<16x16xf32>
    %18 = tpu.matmul %17, %16, %cst_20 {dimension_numbers = #tpu.dot_dimension_numbers<[1], [0], [0], [1], [0, 0, 1, 1], [], []>} : vector<16x16xbf16>, vector<16x16xbf16>, vector<16x16xf32> -> vector<16x16xf32>
    %c1_21 = arith.constant 1 : index
    %c0_22 = arith.constant 0 : index
    %c0_23 = arith.constant 0 : index
    %19 = vector.load %arg4[%c1_21, %c0_22, %c0_23] : memref<6x16x16xf32, #tpu.memory_space<vmem>>, vector<1x16x16xf32>
    %20 = vector.shape_cast %19 : vector<1x16x16xf32> to vector<16x16xf32>
    %21 = vector.shape_cast %18 : vector<16x16xf32> to vector<1x16x16xf32>
    tpu.vector_store %arg4[%c1_21, %c0_22, %c0_23], %21 {strides = array<i32>} : memref<6x16x16xf32, #tpu.memory_space<vmem>>, vector<1x16x16xf32>,
    %c2 = arith.constant 2 : index
    %c0_24 = arith.constant 0 : index
    %c0_25 = arith.constant 0 : index
    %22 = vector.load %arg5[%c2, %c0_24, %c0_25] : memref<6x16x16xf32, #tpu.memory_space<vmem>>, vector<1x16x16xf32>
    %23 = vector.shape_cast %22 : vector<1x16x16xf32> to vector<16x16xf32>
    %24 = arith.truncf %23 : vector<16x16xf32> to vector<16x16xbf16>
    %c0_26 = arith.constant 0 : index
    %c0_27 = arith.constant 0 : index
    %25 = vector.load %arg2[%c0_26, %c0_27] : memref<16x16xbf16, #tpu.memory_space<vmem>>, vector<16x16xbf16>
    %cst_28 = arith.constant dense<0.000000e+00> : vector<16x16xf32>
    %26 = tpu.matmul %25, %24, %cst_28 {dimension_numbers = #tpu.dot_dimension_numbers<[1], [0], [0], [1], [0, 0, 1, 1], [], []>} : vector<16x16xbf16>, vector<16x16xbf16>, vector<16x16xf32> -> vector<16x16xf32>
    %c2_29 = arith.constant 2 : index
    %c0_30 = arith.constant 0 : index
    %c0_31 = arith.constant 0 : index
    %27 = vector.load %arg4[%c2_29, %c0_30, %c0_31] : memref<6x16x16xf32, #tpu.memory_space<vmem>>, vector<1x16x16xf32>
    %28 = vector.shape_cast %27 : vector<1x16x16xf32> to vector<16x16xf32>
    %29 = vector.shape_cast %26 : vector<16x16xf32> to vector<1x16x16xf32>
    tpu.vector_store %arg4[%c2_29, %c0_30, %c0_31], %29 {strides = array<i32>} : memref<6x16x16xf32, #tpu.memory_space<vmem>>, vector<1x16x16xf32>,
    %c3 = arith.constant 3 : index
    %c0_32 = arith.constant 0 : index
    %c0_33 = arith.constant 0 : index
    %30 = vector.load %arg5[%c3, %c0_32, %c0_33] : memref<6x16x16xf32, #tpu.memory_space<vmem>>, vector<1x16x16xf32>
    %31 = vector.shape_cast %30 : vector<1x16x16xf32> to vector<16x16xf32>
    %32 = arith.truncf %31 : vector<16x16xf32> to vector<16x16xbf16>
    %c0_34 = arith.constant 0 : index
    %c0_35 = arith.constant 0 : index
    %33 = vector.load %arg2[%c0_34, %c0_35] : memref<16x16xbf16, #tpu.memory_space<vmem>>, vector<16x16xbf16>
    %cst_36 = arith.constant dense<0.000000e+00> : vector<16x16xf32>
    %34 = tpu.matmul %33, %32, %cst_36 {dimension_numbers = #tpu.dot_dimension_numbers<[1], [0], [0], [1], [0, 0, 1, 1], [], []>} : vector<16x16xbf16>, vector<16x16xbf16>, vector<16x16xf32> -> vector<16x16xf32>
    %c3_37 = arith.constant 3 : index
    %c0_38 = arith.constant 0 : index
    %c0_39 = arith.constant 0 : index
    %35 = vector.load %arg4[%c3_37, %c0_38, %c0_39] : memref<6x16x16xf32, #tpu.memory_space<vmem>>, vector<1x16x16xf32>
    %36 = vector.shape_cast %35 : vector<1x16x16xf32> to vector<16x16xf32>
    %37 = vector.shape_cast %34 : vector<16x16xf32> to vector<1x16x16xf32>
    tpu.vector_store %arg4[%c3_37, %c0_38, %c0_39], %37 {strides = array<i32>} : memref<6x16x16xf32, #tpu.memory_space<vmem>>, vector<1x16x16xf32>,
    %c4 = arith.constant 4 : index
    %c0_40 = arith.constant 0 : index
    %c0_41 = arith.constant 0 : index
    %38 = vector.load %arg5[%c4, %c0_40, %c0_41] : memref<6x16x16xf32, #tpu.memory_space<vmem>>, vector<1x16x16xf32>
    %39 = vector.shape_cast %38 : vector<1x16x16xf32> to vector<16x16xf32>
    %40 = arith.truncf %39 : vector<16x16xf32> to vector<16x16xbf16>
    %c0_42 = arith.constant 0 : index
    %c0_43 = arith.constant 0 : index
    %41 = vector.load %arg2[%c0_42, %c0_43] : memref<16x16xbf16, #tpu.memory_space<vmem>>, vector<16x16xbf16>
    %cst_44 = arith.constant dense<0.000000e+00> : vector<16x16xf32>
    %42 = tpu.matmul %41, %40, %cst_44 {dimension_numbers = #tpu.dot_dimension_numbers<[1], [0], [0], [1], [0, 0, 1, 1], [], []>} : vector<16x16xbf16>, vector<16x16xbf16>, vector<16x16xf32> -> vector<16x16xf32>
    %c4_45 = arith.constant 4 : index
    %c0_46 = arith.constant 0 : index
    %c0_47 = arith.constant 0 : index
    %43 = vector.load %arg4[%c4_45, %c0_46, %c0_47] : memref<6x16x16xf32, #tpu.memory_space<vmem>>, vector<1x16x16xf32>
    %44 = vector.shape_cast %43 : vector<1x16x16xf32> to vector<16x16xf32>
    %45 = vector.shape_cast %42 : vector<16x16xf32> to vector<1x16x16xf32>
    tpu.vector_store %arg4[%c4_45, %c0_46, %c0_47], %45 {strides = array<i32>} : memref<6x16x16xf32, #tpu.memory_space<vmem>>, vector<1x16x16xf32>,
    %c5 = arith.constant 5 : index
    %c0_48 = arith.constant 0 : index
    %c0_49 = arith.constant 0 : index
    %46 = vector.load %arg5[%c5, %c0_48, %c0_49] : memref<6x16x16xf32, #tpu.memory_space<vmem>>, vector<1x16x16xf32>
    %47 = vector.shape_cast %46 : vector<1x16x16xf32> to vector<16x16xf32>
    %48 = arith.truncf %47 : vector<16x16xf32> to vector<16x16xbf16>
    %c0_50 = arith.constant 0 : index
    %c0_51 = arith.constant 0 : index
    %49 = vector.load %arg2[%c0_50, %c0_51] : memref<16x16xbf16, #tpu.memory_space<vmem>>, vector<16x16xbf16>
    %cst_52 = arith.constant dense<0.000000e+00> : vector<16x16xf32>
    %50 = tpu.matmul %49, %48, %cst_52 {dimension_numbers = #tpu.dot_dimension_numbers<[1], [0], [0], [1], [0, 0, 1, 1], [], []>} : vector<16x16xbf16>, vector<16x16xbf16>, vector<16x16xf32> -> vector<16x16xf32>
    %c5_53 = arith.constant 5 : index
    %c0_54 = arith.constant 0 : index
    %c0_55 = arith.constant 0 : index
    %51 = vector.load %arg4[%c5_53, %c0_54, %c0_55] : memref<6x16x16xf32, #tpu.memory_space<vmem>>, vector<1x16x16xf32>
    %52 = vector.shape_cast %51 : vector<1x16x16xf32> to vector<16x16xf32>
    %53 = vector.shape_cast %50 : vector<16x16xf32> to vector<1x16x16xf32>
    tpu.vector_store %arg4[%c5_53, %c0_54, %c0_55], %53 {strides = array<i32>} : memref<6x16x16xf32, #tpu.memory_space<vmem>>, vector<1x16x16xf32>,
    return
  }
  func.func @transform_0(%arg0: i32) -> (i32, i32, i32) {
    %c0_i32 = arith.constant 0 : i32
    %c0_i32_0 = arith.constant 0 : i32
    %c0_i32_1 = arith.constant 0 : i32
    return %arg0, %c0_i32, %c0_i32_0 : i32, i32, i32
  }
  func.func @transform_1(%arg0: i32) -> (i32, i32) {
    %c0_i32 = arith.constant 0 : i32
    %c0_i32_0 = arith.constant 0 : i32
    %c0_i32_1 = arith.constant 0 : i32
    return %c0_i32, %c0_i32_0 : i32, i32
  }
  func.func @transform_2(%arg0: i32) -> (i32, i32) {
    %c0_i32 = arith.constant 0 : i32
    %c0_i32_0 = arith.constant 0 : i32
    %c0_i32_1 = arith.constant 0 : i32
    return %c0_i32, %c0_i32_0 : i32, i32
  }
  func.func @transform_3(%arg0: i32) -> (i32, i32, i32) {
    %c0_i32 = arith.constant 0 : i32
    %c0_i32_0 = arith.constant 0 : i32
    %c0_i32_1 = arith.constant 0 : i32
    return %arg0, %c0_i32, %c0_i32_0 : i32, i32, i32
  }
}

</mosaic_0001>

<bundles_post_ra>
// kernel: tpu_custom_call.1
= control target key start
LH: loop header
LB: loop body
LE: loop exit
PB: predicated region body
PF: predicated region fallthrough
CT: control target
= control target key end

     0   :  { %8 = vsyncpa [#allocation4], 0  ;;  %s882_s0 = inlined_call_operand.hbm [shape: bf16[6,16,16], index: 0, kind: input, shape index: {}]   ;;  %s883_s1 = inlined_call_operand.hbm [shape: bf16[16,16], index: 1, kind: input, shape index: {}]   ;;  %s884_s2 = inlined_call_operand.hbm [shape: bf16[16,16], index: 2, kind: input, shape index: {}]   ;;  %s885_s3 = inlined_call_operand.hbm [shape: f32[6,16,16], index: 3, kind: output, shape index: {}]  }
   0x1   :  { %9 = vsyncpa [#allocation7], 0 }
   0x2   :  { %10 = vsyncpa [#allocation5], 0  ;;  %s786_s12 = smov [#allocation6]   ;;  %s787_s14 = smov [#allocation3]  }
   0x3   :  { %s28_s13 = sshll.u32 %s786_s12, 4  ;;  %s16_s15 = sshll.u32 %s787_s14, 4  ;;  %s29_s13 = int_to_ptr.vmem [resolvable:$true] %s28_s13  ;;  %s17_s15 = int_to_ptr.vmem [resolvable:$true] %s16_s15 }
   0x4   :  { %s708_s16 = scalar_lea.vmem %s29_s13, 128  ;;  %p713_p1 = scmp.lt.s32.totalorder %s29_s13, %s29_s13 }
   0x5   :  { %p709_p0 = scmp.ne.s32.totalorder %s29_s13, %s708_s16  ;;  %p714_p2 = scmp.lt.s32.totalorder %s708_s16, %s708_s16 }
   0x7   :  { %p715_p3 = por %p714_p2, %p713_p1 }
   0x9   :  { %p716_p4 = pnand %p715_p3, %p709_p0 }
   0xb   :  { %719 = shalt.err (!%p716_p4)
}
   0xc   :  { %s788_s17 = smov 64   ;;  %s789_s18 = smov 4  }
   0xd   :  { %34 = dma.hbm_to_vmem [thread:$0]  %s883_s1, 128, %s29_s13, [#allocation7], %s788_s17, %s788_s17, %s789_s18  }
   0xe   :  { %s728_s21 = scalar_lea.vmem %s17_s15, 768  ;;  %p733_p6 = scmp.lt.s32.totalorder %s17_s15, %s17_s15 }
   0xf   :  { %p729_p5 = scmp.ne.s32.totalorder %s17_s15, %s728_s21  ;;  %p734_p7 = scmp.lt.s32.totalorder %s728_s21, %s728_s21 }
  0x11   :  { %p735_p8 = por %p734_p7, %p733_p6 }
  0x13   :  { %p736_p9 = pnand %p735_p8, %p729_p5 }
  0x15   :  { %739 = shalt.err (!%p736_p9)
}
  0x16   :  { %22 = dma.hbm_to_vmem [thread:$0]  %s882_s0, 768, %s17_s15, [#allocation4], %s788_s17, %s788_s17, %s789_s18  }
  0x17   :  { %s790_s24 = smov [#allocation8]  }
  0x18   :  { %s40_s25 = sshll.u32 %s790_s24, 4  ;;  %s41_s25 = int_to_ptr.vmem [resolvable:$true] %s40_s25 }
  0x19   :  { %s748_s26 = scalar_lea.vmem %s41_s25, 128  ;;  %p753_p11 = scmp.lt.s32.totalorder %s41_s25, %s41_s25 }
  0x1a   :  { %p749_p10 = scmp.ne.s32.totalorder %s41_s25, %s748_s26  ;;  %p754_p12 = scmp.lt.s32.totalorder %s748_s26, %s748_s26 }
  0x1c   :  { %p755_p13 = por %p754_p12, %p753_p11 }
  0x1e   :  { %p756_p0 = pnand %p755_p13, %p749_p10 }
  0x20   :  { %759 = shalt.err (!%p756_p0)
}
  0x21   :  { %46 = dma.hbm_to_vmem [thread:$0]  %s884_s2, 128, %s41_s25, [#allocation7], %s788_s17, %s788_s17, %s789_s18  }
  0x22   :  { %780 = dma.done.wait [#allocation4], 768  }
  0x23   :  { %781 = vsyncadd [#allocation4], 4294966528 }
  0x24   :  { %782 = dma.done.wait [#allocation7], 256  }
  0x25   :  { %783 = vsyncadd [#allocation7], 4294967040  ;;  %v687_v0 = vld [vmem:[#allocation8] sm:$0xff]   ;;  %vm107_vm0 = vcmask 130048   ;;  %v688_v1 = vld [vmem:[#allocation3] sm:$0xff]   ;;  %v791_v7 = vmov 0.0  }
  0x26   :  { %627 = vmatprep.subr.bf16.mxu0 %v687_v0  ;;  %v689_v2 = vld [vmem:[#allocation3 + $0x8] sm:$0xff]   ;;  %629 = vmatprep.mubr.msk.bf16.mxu0 %vm107_vm0, %v688_v1  ;;  %v690_v3 = vld [vmem:[#allocation3 + $0x10] sm:$0xff]   ;;  %v691_v4 = vld [vmem:[#allocation3 + $0x18] sm:$0xff]   ;;  %vm792_vm1 = vmmov 0   ;;  %s793_s0 = smov [#allocation9]  }
  0x27   :  { %628 = vmatpush3.bf16.msra.mxu0 %v687_v0  ;;  %v692_v5 = vld [vmem:[#allocation3 + $0x20] sm:$0xff]   ;;  %v693_v6 = vld [vmem:[#allocation3 + $0x28] sm:$0xff]   ;;  %641 = vmatprep.subr.bf16.mxu1 %v791_v7  ;;  %v694_v19 = vld [vmem:[#allocation6] sm:$0xff]   ;;  %s570_s2 = sshll.u32 %s793_s0, 4  ;;  %s571_s2 = int_to_ptr.vmem [resolvable:$true] %s570_s2 }
  0x28   :  { %659 = vmatprep.subr.bf16.mxu0 %v791_v7  ;;  %643 = vmatprep.mubr.msk.bf16.mxu1 %vm792_vm1, %v791_v7  ;;  %v697_v32 = vld [vmem:[#allocation6] sm:$0xff]   ;;  %s760_s28 = scalar_lea.vmem %s571_s2, 1536  ;;  %p765_p2 = scmp.lt.s32.totalorder %s571_s2, %s571_s2 }
  0x29   :  { %v695_v33 = vld [vmem:[#allocation6] sm:$0xff]   ;;  %p761_p1 = scmp.ne.s32.totalorder %s571_s2, %s760_s28  ;;  %p766_p3 = scmp.lt.s32.totalorder %s760_s28, %s760_s28 }
  0x2a   :  { %630 = vmatmul.mubr.msk.bf16.vlgmr.msra.gmra.mxu0 %vm107_vm0, %v689_v2  ;;  %v699_v40 = vld [vmem:[#allocation6] sm:$0xff]  }
  0x2b   :  { %633 = vmatprep.mubr.msk.bf16.mxu0 %vm107_vm0, %v690_v3  ;;  %v696_v41 = vld [vmem:[#allocation6] sm:$0xff]   ;;  %p767_p4 = por %p766_p3, %p765_p2 }
  0x2c   :  { %v698_v43 = vld [vmem:[#allocation6] sm:$0xff]  }
  0x2d   :  { %p768_p5 = pnand %p767_p4, %p761_p1 }
  0x32   :  { %634 = vmatmul.mubr.msk.bf16.gmra.mxu0 %vm107_vm0, %v691_v4 }
  0x33   :  { %637 = vmatprep.mubr.msk.bf16.mxu0 %vm107_vm0, %v692_v5 }
  0x3a   :  { %638 = vmatmul.mubr.msk.bf16.gmra.mxu0 %vm107_vm0, %v693_v6 }
  0x3b   :  { %661 = vmatprep.mubr.msk.bf16.mxu0 %vm792_vm1, %v791_v7 }
  0xea   :  { %v631_v8 = vpop.f32.mrf.mxu0 }
  0xeb   :  { %209 = vst.msk [vmem:[#allocation2 + $0x10] sm:$0xff] %vm107_vm0, %v631_v8 }
  0xec   :  { %v160_v9 = vpop.f32.mrf.mxu0 }
  0xed   :  { %207 = vst.msk [vmem:[#allocation2] sm:$0xff] %vm107_vm0, %v160_v9 }
  0xee   :  { %v632_v10 = vpop.f32.mrf.mxu0 }
  0xef   :  { %210 = vst.msk [vmem:[#allocation2 + $0x18] sm:$0xff] %vm107_vm0, %v632_v10 }
  0xf0   :  { %v163_v11 = vpop.f32.mrf.mxu0 }
  0xf1   :  { %208 = vst.msk [vmem:[#allocation2 + $0x8] sm:$0xff] %vm107_vm0, %v163_v11 }
  0xf2   :  { %v635_v12 = vpop.f32.mrf.mxu0  ;;  %v276_v22 = vld [vmem:[#allocation2 + $0x10] sm:$0xff] }
  0xf3   :  { %213 = vst.msk [vmem:[#allocation2 + $0x30] sm:$0xff] %vm107_vm0, %v635_v12 }
  0xf4   :  { %v176_v13 = vpop.f32.mrf.mxu0  ;;  %v219_v16 = vld [vmem:[#allocation2] sm:$0xff] }
  0xf5   :  { %211 = vst.msk [vmem:[#allocation2 + $0x20] sm:$0xff] %vm107_vm0, %v176_v13 }
  0xf6   :  { %v636_v14 = vpop.f32.mrf.mxu0  ;;  %v277_v20 = vld [vmem:[#allocation2 + $0x18] sm:$0xff] }
  0xf7   :  { %214 = vst.msk [vmem:[#allocation2 + $0x38] sm:$0xff] %vm107_vm0, %v636_v14  ;;  %v278_v25 = vpack.c.bf16 %v277_v20, %v276_v22 }
  0xf8   :  { %v179_v15 = vpop.f32.mrf.mxu0  ;;  %v220_v17 = vld [vmem:[#allocation2 + $0x8] sm:$0xff] }
  0xf9   :  { %212 = vst.msk [vmem:[#allocation2 + $0x28] sm:$0xff] %vm107_vm0, %v179_v15  ;;  %v221_v18 = vpack.c.bf16 %v220_v17, %v219_v16 }
  0xfa   :  { %v639_v21 = vpop.f32.mrf.mxu0  ;;  %v392_v23 = vld [vmem:[#allocation2 + $0x30] sm:$0xff] }
  0xfb   :  { %642 = vmatpush3.bf16.msra.mxu1 %v221_v18  ;;  %217 = vst.msk [vmem:[#allocation2 + $0x50] sm:$0xff] %vm107_vm0, %v639_v21 }
  0xfc   :  { %647 = vmatprep.subr.bf16.mxu1 %v791_v7  ;;  %v192_v24 = vpop.f32.mrf.mxu0  ;;  %v334_v29 = vld [vmem:[#allocation2 + $0x20] sm:$0xff] }
  0xfd   :  { %215 = vst.msk [vmem:[#allocation2 + $0x40] sm:$0xff] %vm107_vm0, %v192_v24 }
  0xfe   :  { %644 = vmatmul.mubr.msk.bf16.vlgmr.msra.gmra.mxu1 %vm107_vm0, %v694_v19  ;;  %v393_v26 = vld [vmem:[#allocation2 + $0x38] sm:$0xff]  ;;  %v640_v27 = vpop.f32.mrf.mxu0 }
  0xff   :  { %648 = vmatpush3.bf16.msra.mxu1 %v278_v25  ;;  %v394_v28 = vpack.c.bf16 %v393_v26, %v392_v23  ;;  %649 = vmatprep.mubr.msk.bf16.mxu1 %vm792_vm1, %v791_v7  ;;  %218 = vst.msk [vmem:[#allocation2 + $0x58] sm:$0xff] %vm107_vm0, %v640_v27 }
 0x100   :  { %653 = vmatprep.subr.bf16.mxu1 %v791_v7  ;;  %v335_v30 = vld [vmem:[#allocation2 + $0x28] sm:$0xff]  ;;  %v195_v31 = vpop.f32.mrf.mxu0 }
 0x101   :  { %660 = vmatpush3.bf16.msra.mxu0 %v394_v28  ;;  %216 = vst.msk [vmem:[#allocation2 + $0x48] sm:$0xff] %vm107_vm0, %v195_v31  ;;  %v336_v34 = vpack.c.bf16 %v335_v30, %v334_v29 }
 0x102   :  { %671 = vmatprep.subr.bf16.mxu0 %v791_v7  ;;  %v508_v35 = vld [vmem:[#allocation2 + $0x50] sm:$0xff] }
 0x104   :  { %662 = vmatmul.mubr.msk.bf16.vlgmr.msra.gmra.mxu0 %vm107_vm0, %v697_v32  ;;  %v450_v38 = vld [vmem:[#allocation2 + $0x40] sm:$0xff] }
 0x105   :  { %673 = vmatprep.mubr.msk.bf16.mxu0 %vm792_vm1, %v791_v7 }
 0x106   :  { %650 = vmatmul.mubr.msk.bf16.vlgmr.msra.gmra.mxu1 %vm107_vm0, %v695_v33  ;;  %v509_v36 = vld [vmem:[#allocation2 + $0x58] sm:$0xff] }
 0x107   :  { %654 = vmatpush3.bf16.msra.mxu1 %v336_v34  ;;  %655 = vmatprep.mubr.msk.bf16.mxu1 %vm792_vm1, %v791_v7  ;;  %v510_v37 = vpack.c.bf16 %v509_v36, %v508_v35 }
 0x108   :  { %665 = vmatprep.subr.bf16.mxu1 %v791_v7  ;;  %v451_v39 = vld [vmem:[#allocation2 + $0x48] sm:$0xff] }
 0x109   :  { %672 = vmatpush3.bf16.msra.mxu0 %v510_v37  ;;  %v452_v42 = vpack.c.bf16 %v451_v39, %v450_v38 }
 0x10c   :  { %674 = vmatmul.mubr.msk.bf16.vlgmr.msra.gmra.mxu0 %vm107_vm0, %v699_v40 }
 0x10e   :  { %656 = vmatmul.mubr.msk.bf16.vlgmr.msra.gmra.mxu1 %vm107_vm0, %v696_v41 }
 0x10f   :  { %666 = vmatpush3.bf16.msra.mxu1 %v452_v42  ;;  %667 = vmatprep.mubr.msk.bf16.mxu1 %vm792_vm1, %v791_v7 }
 0x116   :  { %668 = vmatmul.mubr.msk.bf16.vlgmr.msra.gmra.mxu1 %vm107_vm0, %v698_v43 }
 0x1be   :  { %v266_v44 = vpop.f32.mrf.mxu1 }
 0x1bf   :  { %273 = vst.msk [vmem:[#allocation9] sm:$0xff] %vm107_vm0, %v266_v44 }
 0x1c0   :  { %v645_v45 = vpop.f32.mrf.mxu1 }
 0x1c2   :  { %v269_v46 = vpop.f32.mrf.mxu1 }
 0x1c3   :  { %274 = vst.msk [vmem:[#allocation9 + $0x8] sm:$0xff] %vm107_vm0, %v269_v46 }
 0x1c4   :  { %v646_v47 = vpop.f32.mrf.mxu1  ;;  %v439_v48 = vpop.f32.mrf.mxu0 }
 0x1c5   :  { %447 = vst.msk [vmem:[#allocation9 + $0x30] sm:$0xff] %vm107_vm0, %v439_v48 }
 0x1c6   :  { %v323_v49 = vpop.f32.mrf.mxu1  ;;  %v663_v50 = vpop.f32.mrf.mxu0 }
 0x1c7   :  { %331 = vst.msk [vmem:[#allocation9 + $0x10] sm:$0xff] %vm107_vm0, %v323_v49 }
 0x1c8   :  { %v651_v51 = vpop.f32.mrf.mxu1  ;;  %v442_v52 = vpop.f32.mrf.mxu0 }
 0x1c9   :  { %448 = vst.msk [vmem:[#allocation9 + $0x38] sm:$0xff] %vm107_vm0, %v442_v52 }
 0x1ca   :  { %v326_v53 = vpop.f32.mrf.mxu1  ;;  %v664_v54 = vpop.f32.mrf.mxu0 }
 0x1cb   :  { %332 = vst.msk [vmem:[#allocation9 + $0x18] sm:$0xff] %vm107_vm0, %v326_v53 }
 0x1cc   :  { %v652_v55 = vpop.f32.mrf.mxu1  ;;  %v555_v56 = vpop.f32.mrf.mxu0 }
 0x1cd   :  { %563 = vst.msk [vmem:[#allocation9 + $0x50] sm:$0xff] %vm107_vm0, %v555_v56 }
 0x1ce   :  { %v381_v57 = vpop.f32.mrf.mxu1  ;;  %v675_v58 = vpop.f32.mrf.mxu0 }
 0x1cf   :  { %389 = vst.msk [vmem:[#allocation9 + $0x20] sm:$0xff] %vm107_vm0, %v381_v57 }
 0x1d0   :  { %v657_v59 = vpop.f32.mrf.mxu1  ;;  %v558_v60 = vpop.f32.mrf.mxu0 }
 0x1d1   :  { %564 = vst.msk [vmem:[#allocation9 + $0x58] sm:$0xff] %vm107_vm0, %v558_v60 }
 0x1d2   :  { %v384_v61 = vpop.f32.mrf.mxu1  ;;  %v676_v62 = vpop.f32.mrf.mxu0 }
 0x1d3   :  { %390 = vst.msk [vmem:[#allocation9 + $0x28] sm:$0xff] %vm107_vm0, %v384_v61 }
 0x1d4   :  { %v658_v63 = vpop.f32.mrf.mxu1 }
 0x1d6   :  { %v497_v0 = vpop.f32.mrf.mxu1 }
 0x1d7   :  { %505 = vst.msk [vmem:[#allocation9 + $0x40] sm:$0xff] %vm107_vm0, %v497_v0 }
 0x1d8   :  { %v669_v1 = vpop.f32.mrf.mxu1 }
 0x1da   :  { %v500_v2 = vpop.f32.mrf.mxu1 }
 0x1db   :  { %506 = vst.msk [vmem:[#allocation9 + $0x48] sm:$0xff] %vm107_vm0, %v500_v2 }
 0x1dc   :  { %v670_v3 = vpop.f32.mrf.mxu1 }
 0x1dd   :  { %771 = shalt.err (!%p768_p5)
}
 0x1de   :  { %s794_s29 = smov 128   ;;  %s795_s30 = smov 8  }
 0x1df   :  { %576 = dma.vmem_to_hbm [thread:$0]  %s571_s2, 1536, %s885_s3, [#allocation5], %s794_s29, %s794_s29, %s795_s30  }
 0x1e0   :  { %784 = dma.done.wait [#allocation5], 1536  }
 0x1e1   :  { %785 = vsyncadd [#allocation5], 4294965760 }
 0x1e2   :  { %580 = vsyncpa [#allocation4], 1 }
 0x1e3   :  { %581 = vsyncpa [#allocation7], 1 }
 0x1e4   :  { %582 = vsyncpa [#allocation5], 1 }

</bundles_post_ra>
